<compile_context>
chip_gen: v5e
topology: v5e:2x2
jax: 0.10.0
libtpu: 0.0.40
codegen_flags: <defaults>
</compile_context>

<pallas_src>
import jax
import jax.numpy as jnp
from jax.experimental import pallas as pl
from jax.experimental.pallas import tpu as pltpu

LANE = 128              # TPU lane width: pad the class dim to this for lane-dense stores
DEFAULT_BLOCK_B = 1024  # batch tile (multiple of 8); ~17 MiB tile footprint, fits all gens


def _round_up(n, m):
    return ((n + m - 1) // m) * m


def _fc_kernel(feat_ref, wt_ref, b_ref, out_ref):
    # feat_ref: (TB, F)  f32  -- batch tile of flattened backbone features (cast fused below)
    # wt_ref:   (F, Cp)  bf16 -- pre-transposed, lane-padded fc weight (VMEM-resident)
    # b_ref:    (1, Cp)  f32  -- lane-padded bias
    # out_ref:  (TB, Cp) f32
    feat = feat_ref[...].astype(jnp.bfloat16)   # fused f32->bf16 cast (hidden under DMA)
    acc = jnp.dot(feat, wt_ref[...], preferred_element_type=jnp.float32)
    out_ref[...] = (acc + b_ref[...]).astype(out_ref.dtype)


def prepare_fc_params(fc_weight, fc_bias, compute_dtype=jnp.bfloat16):
    """One-time (weight-load-time) prep: transpose, cast to bf16, pad C up to 128 lanes.

    fc_weight: (num_class, 2048)  torch nn.Linear layout
    fc_bias:   (num_class,)
    returns:   wt (2048, Cp) bf16,  b2 (1, Cp) f32   with Cp = round_up(num_class, 128)
    """
    C, F = fc_weight.shape
    Cp = _round_up(C, LANE)
    wt = jnp.zeros((F, Cp), dtype=compute_dtype)
    wt = wt.at[:, :C].set(fc_weight.T.astype(compute_dtype))
    b2 = jnp.zeros((1, Cp), dtype=jnp.float32)
    b2 = b2.at[:, :C].set(fc_bias.astype(jnp.float32))
    return wt, b2


def net_forward(x, wt, b2, num_class, *, block_b=DEFAULT_BLOCK_B):
    """Pallas implementation of Net.forward given the backbone output `x`.

    x:  (B, 2048, 1, 1) float32 -- backbone output (NCHW), stands in for self.f(x)
    wt: (2048, Cp) bf16         -- from prepare_fc_params
    b2: (1, Cp) f32             -- from prepare_fc_params
    returns: (B, num_class) float32
    """
    B = x.shape[0]
    F, Cp = wt.shape

    # torch.flatten(x, start_dim=1): (B, 2048, 1, 1) -> (B, 2048).
    # No dtype cast and no pad here: cast is fused in-kernel, ragged tiles masked by Pallas.
    feat = x.reshape(B, -1)
    assert feat.shape[1] == F, f"flattened feature dim {feat.shape[1]} != {F}"

    # Batch tile: TB must be a multiple of 8 (sublane) unless it spans the whole batch.
    # For non-trivial batches force >= 2 grid steps so both v7x TensorCores get a tile.
    if B <= 16:
        TB = B
    else:
        TB = min(block_b, _round_up(pl.cdiv(B, 2), 8))
    grid = (pl.cdiv(B, TB),)

    # Scoped-VMEM limit from actual footprint + headroom (never the full 64 MiB of a v7x core;
    # also above v5e's 16 MiB default so the larger tiles still compile there).
    # Weight/bias budgeted at the default 2 buffers (they stay resident anyway).
    vmem_bytes = (2 * TB * F * 4      # feature tiles (f32, double-buffered)
                  + 2 * F * Cp * 2    # weight (bf16)
                  + 2 * Cp * 4        # bias (f32)
                  + 2 * TB * Cp * 4)  # output tiles (f32, double-buffered)
    vmem_limit = int(min(48 * 1024 * 1024, vmem_bytes + (4 << 20)))

    cost = pl.CostEstimate(
        flops=2 * B * F * Cp,
        transcendentals=0,
        bytes_accessed=B * F * 4 + F * Cp * 2 + Cp * 4 + B * Cp * 4,
    )

    out = pl.pallas_call(
        _fc_kernel,
        out_shape=jax.ShapeDtypeStruct((B, Cp), jnp.float32),
        grid=grid,
        in_specs=[
            pl.BlockSpec((TB, F), lambda i: (i, 0)),   # feature tile, pipelined over batch
            pl.BlockSpec((F, Cp), lambda i: (0, 0)),   # weight: DMA'd once, stays resident
            pl.BlockSpec((1, Cp), lambda i: (0, 0)),   # bias: resident
        ],
        out_specs=pl.BlockSpec((TB, Cp), lambda i: (i, 0)),  # lane-dense (Cp = k*128) output
        compiler_params=pltpu.CompilerParams(
            dimension_semantics=("parallel",),          # shards batch tiles across TCs (v7x)
            vmem_limit_bytes=vmem_limit,
        ),
        cost_estimate=cost,
    )(feat, wt, b2)

    # Drop the lane padding of the class dim (batch is already exactly B rows).
    return out[:, :num_class]


if __name__ == "__main__":
    B = 2
    F = 2048
    NUM_CLASS = 10

    key = jax.random.PRNGKey(0)
    kx, kw, kb = jax.random.split(key, 3)

    # Backbone output feature map (B, 2048, 1, 1), NCHW — stands in for self.f(x).
    x = jax.random.normal(kx, (B, F, 1, 1), dtype=jnp.float32)

    # Deterministic nn.Linear(2048, num_class) init: U(-1/sqrt(F), 1/sqrt(F)).
    bound = 1.0 / (F ** 0.5)
    fc_weight = jax.random.uniform(kw, (NUM_CLASS, F), minval=-bound, maxval=bound,
                                   dtype=jnp.float32)
    fc_bias = jax.random.uniform(kb, (NUM_CLASS,), minval=-bound, maxval=bound,
                                 dtype=jnp.float32)

    # One-time weight prep (transpose + bf16 cast + lane padding), hoisted off the call path.
    wt, b2 = prepare_fc_params(fc_weight, fc_bias)

    out = net_forward(x, wt, b2, NUM_CLASS)
    out = jax.block_until_ready(out)
    assert out.shape == (B, NUM_CLASS)

    # Reference 1: same bf16-rounded inputs, f32 accumulation (tight tolerance).
    feat = x.reshape(B, -1)
    ref_bf16 = jnp.dot(feat.astype(jnp.bfloat16), fc_weight.T.astype(jnp.bfloat16),
                       preferred_element_type=jnp.float32) + fc_bias
    assert jnp.allclose(out, ref_bf16, atol=1e-3, rtol=1e-3), "mismatch vs bf16 reference"

    # Reference 2: full f32 math (loose tolerance — bf16 MXU inputs).
    ref_f32 = feat @ fc_weight.T + fc_bias
    assert jnp.allclose(out, ref_f32, atol=5e-2, rtol=5e-2), "mismatch vs f32 reference"

    print("KERNEL_OK")
</pallas_src>

<mosaic_0001>
module attributes {stable_mosaic.version = 11 : i64} {
  func.func @_fc_kernel(%arg0: i32, %arg1: memref<2x2048xf32, #tpu.memory_space<vmem>>, %arg2: memref<2048x128xbf16, #tpu.memory_space<vmem>>, %arg3: memref<1x128xf32, #tpu.memory_space<vmem>>, %arg4: memref<2x128xf32, #tpu.memory_space<vmem>>) attributes {dimension_semantics = [#tpu.dimension_semantics<parallel>], iteration_bounds = array<i64: 1>, scalar_prefetch = 0 : i64, scratch_operands = 0 : i64, tpu.core_type = #tpu.core_type<tc>, window_params = [{transform_indices = @transform_0, window_bounds = array<i64: 2, 2048>}, {pipeline_mode = #tpu.pipeline_mode<synchronous>, transform_indices = @transform_1, window_bounds = array<i64: 2048, 128>}, {pipeline_mode = #tpu.pipeline_mode<synchronous>, transform_indices = @transform_2, window_bounds = array<i64: 1, 128>}, {transform_indices = @transform_3, window_bounds = array<i64: 2, 128>}]} {
    %c0 = arith.constant 0 : index
    %c0_0 = arith.constant 0 : index
    %0 = vector.load %arg1[%c0, %c0_0] : memref<2x2048xf32, #tpu.memory_space<vmem>>, vector<2x2048xf32>
    %1 = arith.truncf %0 : vector<2x2048xf32> to vector<2x2048xbf16>
    %c0_1 = arith.constant 0 : index
    %c0_2 = arith.constant 0 : index
    %2 = vector.load %arg2[%c0_1, %c0_2] : memref<2048x128xbf16, #tpu.memory_space<vmem>>, vector<2048x128xbf16>
    %cst = arith.constant dense<0.000000e+00> : vector<2x128xf32>
    %3 = tpu.matmul %1, %2, %cst {dimension_numbers = #tpu.dot_dimension_numbers<[1], [0], [0], [1], [0, 0, 1, 1], [], []>} : vector<2x2048xbf16>, vector<2048x128xbf16>, vector<2x128xf32> -> vector<2x128xf32>
    %c0_3 = arith.constant 0 : index
    %c0_4 = arith.constant 0 : index
    %4 = vector.load %arg3[%c0_3, %c0_4] : memref<1x128xf32, #tpu.memory_space<vmem>>, vector<1x128xf32>
    %5 = vector.broadcast %4 : vector<1x128xf32> to vector<2x128xf32>
    %6 = arith.addf %3, %5 : vector<2x128xf32>
    %c0_5 = arith.constant 0 : index
    %c0_6 = arith.constant 0 : index
    %7 = vector.load %arg4[%c0_5, %c0_6] : memref<2x128xf32, #tpu.memory_space<vmem>>, vector<2x128xf32>
    tpu.vector_store %arg4[%c0_5, %c0_6], %6 {strides = array<i32>} : memref<2x128xf32, #tpu.memory_space<vmem>>, vector<2x128xf32>,
    return
  }
  func.func @transform_0(%arg0: i32) -> (i32, i32) {
    %c0_i32 = arith.constant 0 : i32
    %c0_i32_0 = arith.constant 0 : i32
    return %arg0, %c0_i32 : i32, i32
  }
  func.func @transform_1(%arg0: i32) -> (i32, i32) {
    %c0_i32 = arith.constant 0 : i32
    %c0_i32_0 = arith.constant 0 : i32
    %c0_i32_1 = arith.constant 0 : i32
    return %c0_i32, %c0_i32_0 : i32, i32
  }
  func.func @transform_2(%arg0: i32) -> (i32, i32) {
    %c0_i32 = arith.constant 0 : i32
    %c0_i32_0 = arith.constant 0 : i32
    %c0_i32_1 = arith.constant 0 : i32
    return %c0_i32, %c0_i32_0 : i32, i32
  }
  func.func @transform_3(%arg0: i32) -> (i32, i32) {
    %c0_i32 = arith.constant 0 : i32
    %c0_i32_0 = arith.constant 0 : i32
    return %arg0, %c0_i32 : i32, i32
  }
}

</mosaic_0001>

<bundles_post_ra>
// kernel: tpu_custom_call.1
= control target key start
LH: loop header
LB: loop body
LE: loop exit
PB: predicated region body
PF: predicated region fallthrough
CT: control target
= control target key end

     0   :  { %8 = vsyncpa [#allocation3], 0  ;;  %s2138_s0 = inlined_call_operand.hbm [shape: f32[2,2048], index: 0, kind: input, shape index: {}]   ;;  %s2139_s1 = inlined_call_operand.hbm [shape: bf16[2048,128], index: 1, kind: input, shape index: {}]   ;;  %s2140_s2 = inlined_call_operand.vmem [shape: f32[1,128], index: 2, kind: input, shape index: {}]   ;;  %s2141_s3 = inlined_call_operand.hbm [shape: f32[2,128], index: 3, kind: output, shape index: {}]  }
   0x1   :  { %9 = vsyncpa [#allocation6], 0 }
   0x2   :  { %10 = vsyncpa [#allocation4], 0  ;;  %s16_s14 = sshll.u32 %s2138_s0, 4  ;;  %s2085_s15 = smov [#allocation2]   ;;  %s17_s14 = int_to_ptr.hbm [resolvable:$true] %s16_s14 }
   0x3   :  { %s18_s16 = sshll.u32 %s2085_s15, 4  ;;  %s26_s19 = sshll.u32 %s2139_s1, 4  ;;  %s19_s16 = int_to_ptr.vmem [resolvable:$true] %s18_s16  ;;  %s27_s19 = int_to_ptr.hbm [resolvable:$true] %s26_s19 }
   0x4   :  { %21 = dma.hbm_to_vmem [thread:$0]  %s17_s14, 512, %s19_s16, [#allocation3]  }
   0x5   :  { %s2086_s20 = smov [#allocation5]   ;;  %s2087_s22 = smov 64  }
   0x6   :  { %s28_s21 = sshll.u32 %s2086_s20, 4  ;;  %s2088_s23 = smov 4   ;;  %s29_s21 = int_to_ptr.vmem [resolvable:$true] %s28_s21 }
   0x7   :  { %34 = dma.hbm_to_vmem [thread:$0]  %s27_s19, 16384, %s29_s21, [#allocation6], %s2087_s22, %s2087_s22, %s2088_s23  }
   0x8   :  { %2079 = dma.done.wait [#allocation3], 512  }
   0x9   :  { %2080 = vsyncadd [#allocation3], 4294966784 }
   0xa   :  { %2081 = dma.done.wait [#allocation6], 16384  }
   0xb   :  { %2082 = vsyncadd [#allocation6], 4294950912  ;;  %v1880_v0 = vld [vmem:[#allocation5 + $0x38] sm:$0xff]  ;;  %v1879_v4 = vld [vmem:[#allocation5 + $0x30] sm:$0xff]  ;;  %s1350_s27 = sshll.u32 %s2141_s3, 4  ;;  %s1351_s27 = int_to_ptr.hbm [resolvable:$true] %s1350_s27 }
   0xc   :  { %v1888_v1 = vld [vmem:[#allocation5 + $0x78] sm:$0xff]  ;;  %1134 = vmatpush.bf16.msra.mxu0 %v1880_v0  ;;  %v1887_v5 = vld [vmem:[#allocation5 + $0x70] sm:$0xff]  ;;  %v1878_v8 = vld [vmem:[#allocation5 + $0x28] sm:$0xff] }
   0xd   :  { %v1896_v2 = vld [vmem:[#allocation5 + $0xb8] sm:$0xff]  ;;  %1147 = vmatpush.bf16.msra.mxu1 %v1888_v1  ;;  %v1895_v6 = vld [vmem:[#allocation5 + $0xb0] sm:$0xff]  ;;  %v1886_v9 = vld [vmem:[#allocation5 + $0x68] sm:$0xff] }
   0xe   :  { %v1904_v3 = vld [vmem:[#allocation5 + $0xf8] sm:$0xff]  ;;  %1160 = vmatpush.bf16.msra.mxu2 %v1896_v2  ;;  %v1903_v7 = vld [vmem:[#allocation5 + $0xf0] sm:$0xff]  ;;  %v1894_v10 = vld [vmem:[#allocation5 + $0xa8] sm:$0xff] }
   0xf   :  { %1173 = vmatpush.bf16.msra.mxu3 %v1904_v3  ;;  %v1902_v11 = vld [vmem:[#allocation5 + $0xe8] sm:$0xff]  ;;  %v1877_v12 = vld [vmem:[#allocation5 + $0x20] sm:$0xff]  ;;  %v1876_v16 = vld [vmem:[#allocation5 + $0x18] sm:$0xff] }
  0x10   :  { %1135 = vmatpush.bf16.msra.mxu0 %v1879_v4  ;;  %v1885_v13 = vld [vmem:[#allocation5 + $0x60] sm:$0xff]  ;;  %v1884_v17 = vld [vmem:[#allocation5 + $0x58] sm:$0xff]  ;;  %v1875_v21 = vld [vmem:[#allocation5 + $0x10] sm:$0xff] }
  0x11   :  { %1148 = vmatpush.bf16.msra.mxu1 %v1887_v5  ;;  %v1893_v14 = vld [vmem:[#allocation5 + $0xa0] sm:$0xff]  ;;  %v1892_v18 = vld [vmem:[#allocation5 + $0x98] sm:$0xff]  ;;  %v1883_v22 = vld [vmem:[#allocation5 + $0x50] sm:$0xff] }
  0x12   :  { %1161 = vmatpush.bf16.msra.mxu2 %v1895_v6  ;;  %v1901_v15 = vld [vmem:[#allocation5 + $0xe0] sm:$0xff]  ;;  %v1900_v19 = vld [vmem:[#allocation5 + $0xd8] sm:$0xff]  ;;  %v1891_v23 = vld [vmem:[#allocation5 + $0x90] sm:$0xff] }
  0x13   :  { %1174 = vmatpush.bf16.msra.mxu3 %v1903_v7  ;;  %v45_v20 = vld [vmem:[#allocation2] sm:$0xff]  ;;  %v1899_v24 = vld [vmem:[#allocation5 + $0xd0] sm:$0xff]  ;;  %v1874_v25 = vld [vmem:[#allocation5 + $0x8] sm:$0xff] }
  0x14   :  { %1136 = vmatpush.bf16.msra.mxu0 %v1878_v8  ;;  %53 = vst [vmem:[#allocation1] ss:$4 sm:$0xff] %v45_v20  ;;  %v1882_v26 = vld [vmem:[#allocation5 + $0x48] sm:$0xff]  ;;  %v1873_v29 = vld [vmem:[#allocation5] sm:$0xff]  ;;  %v47_v31 = vld [vmem:[#allocation2 + $0x10] sm:$0xff] }
  0x15   :  { %1149 = vmatpush.bf16.msra.mxu1 %v1886_v9  ;;  %v1890_v27 = vld [vmem:[#allocation5 + $0x88] sm:$0xff]  ;;  %v1881_v30 = vld [vmem:[#allocation5 + $0x40] sm:$0xff]  ;;  %v1912_v38 = vld [vmem:[#allocation5 + $0x138] sm:$0xff] }
  0x16   :  { %1162 = vmatpush.bf16.msra.mxu2 %v1894_v10  ;;  %v1898_v28 = vld [vmem:[#allocation5 + $0xc8] sm:$0xff]  ;;  %v1889_v36 = vld [vmem:[#allocation5 + $0x80] sm:$0xff]  ;;  %v1920_v39 = vld [vmem:[#allocation5 + $0x178] sm:$0xff] }
  0x17   :  { %1175 = vmatpush.bf16.msra.mxu3 %v1902_v11  ;;  %v1897_v37 = vld [vmem:[#allocation5 + $0xc0] sm:$0xff]  ;;  %v1928_v40 = vld [vmem:[#allocation5 + $0x1b8] sm:$0xff]  ;;  %v46_v42 = vld [vmem:[#allocation2 + $0x8] sm:$0xff] }
  0x18   :  { %1137 = vmatpush.bf16.msra.mxu0 %v1877_v12  ;;  %v1936_v41 = vld [vmem:[#allocation5 + $0x1f8] sm:$0xff]  ;;  %55 = vst [vmem:[#allocation1 + $0x20] ss:$4 sm:$0xff] %v46_v42  ;;  %v1911_v47 = vld [vmem:[#allocation5 + $0x130] sm:$0xff]  ;;  %v1910_v51 = vld [vmem:[#allocation5 + $0x128] sm:$0xff] }
  0x19   :  { %1150 = vmatpush.bf16.msra.mxu1 %v1885_v13  ;;  %v1919_v48 = vld [vmem:[#allocation5 + $0x170] sm:$0xff]  ;;  %v1918_v52 = vld [vmem:[#allocation5 + $0x168] sm:$0xff]  ;;  %v48_v58 = vld [vmem:[#allocation2 + $0x18] sm:$0xff] }
  0x1a   :  { %1163 = vmatpush.bf16.msra.mxu2 %v1893_v14  ;;  %v1927_v49 = vld [vmem:[#allocation5 + $0x1b0] sm:$0xff]  ;;  %v1926_v53 = vld [vmem:[#allocation5 + $0x1a8] sm:$0xff]  ;;  %v1909_v60 = vld [vmem:[#allocation5 + $0x120] sm:$0xff] }
  0x1b   :  { %1176 = vmatpush.bf16.msra.mxu3 %v1901_v15  ;;  %v58_v32 = vld.sshfl [vmem:[#allocation1 + $0x10] sm:$0xff pattern:$0x73625140]  ;;  %v56_v33 = vld.sshfl [vmem:[#allocation1] sm:$0xff pattern:$0x73625140] }
  0x1c   :  { %1138 = vmatpush.bf16.msra.mxu0 %v1876_v16  ;;  %v59_v34 = vld.sshfl [vmem:[#allocation1 + $0x18] sm:$0xff pattern:$0x73625140]  ;;  %v57_v35 = vld.sshfl [vmem:[#allocation1 + $0x8] sm:$0xff pattern:$0x73625140]  ;;  %v92_v43 = vpack.c.bf16 %v58_v32, %v58_v32  ;;  %v90_v44 = vpack.c.bf16 %v56_v33, %v56_v33 }
  0x1d   :  { %1151 = vmatpush.bf16.msra.mxu1 %v1884_v17  ;;  %64 = vst [vmem:[#allocation1] ss:$4 sm:$0xff] %v47_v31  ;;  %v93_v45 = vpack.c.bf16 %v59_v34, %v59_v34  ;;  %v91_v46 = vpack.c.bf16 %v57_v35, %v57_v35  ;;  %v1935_v50 = vld [vmem:[#allocation5 + $0x1f0] sm:$0xff]  ;;  %v1934_v54 = vld [vmem:[#allocation5 + $0x1e8] sm:$0xff]  ;;  %v1917_v61 = vld [vmem:[#allocation5 + $0x160] sm:$0xff] }
  0x1e   :  { %1164 = vmatpush.bf16.msra.mxu2 %v1892_v18  ;;  %v1925_v62 = vld [vmem:[#allocation5 + $0x1a0] sm:$0xff]  ;;  %v1908_v0 = vld [vmem:[#allocation5 + $0x118] sm:$0xff]  ;;  %v1907_v4 = vld [vmem:[#allocation5 + $0x110] sm:$0xff] }
  0x1f   :  { %1177 = vmatpush.bf16.msra.mxu3 %v1900_v19  ;;  %v2116_v55 = vld.sshfl [vmem:[#allocation1 + $0x30] sm:$0xff pattern:$0x73625140]  ;;  %v2118_v56 = vld.sshfl [vmem:[#allocation1 + $0x20] sm:$0xff pattern:$0x73625140] }
  0x20   :  { %1139 = vmatpush.bf16.msra.mxu0 %v1875_v21  ;;  %v2120_v57 = vld.sshfl [vmem:[#allocation1 + $0x38] sm:$0xff pattern:$0x73625140]  ;;  %v2122_v59 = vld.sshfl [vmem:[#allocation1 + $0x28] sm:$0xff pattern:$0x73625140]  ;;  %v96_v20 = vpack.c.bf16 %v2116_v55, %v2116_v55  ;;  %v94_v21 = vpack.c.bf16 %v2118_v56, %v2118_v56 }
  0x21   :  { %1152 = vmatpush.bf16.msra.mxu1 %v1883_v22  ;;  %65 = vst [vmem:[#allocation1 + $0x20] ss:$4 sm:$0xff] %v48_v58  ;;  %v1933_v63 = vld [vmem:[#allocation5 + $0x1e0] sm:$0xff]  ;;  %v1916_v1 = vld [vmem:[#allocation5 + $0x158] sm:$0xff]  ;;  %v1915_v5 = vld [vmem:[#allocation5 + $0x150] sm:$0xff]  ;;  %v97_v22 = vpack.c.bf16 %v2120_v57, %v2120_v57 }
  0x22   :  { %1165 = vmatpush.bf16.msra.mxu2 %v1891_v23  ;;  %v1924_v2 = vld [vmem:[#allocation5 + $0x198] sm:$0xff]  ;;  %v1923_v6 = vld [vmem:[#allocation5 + $0x190] sm:$0xff]  ;;  %v1906_v8 = vld [vmem:[#allocation5 + $0x108] sm:$0xff]  ;;  %v95_v23 = vpack.c.bf16 %v2122_v59, %v2122_v59 }
  0x23   :  { %1178 = vmatpush.bf16.msra.mxu3 %v1899_v24  ;;  %v1932_v3 = vld [vmem:[#allocation5 + $0x1d8] sm:$0xff]  ;;  %v1931_v7 = vld [vmem:[#allocation5 + $0x1d0] sm:$0xff]  ;;  %v1914_v9 = vld [vmem:[#allocation5 + $0x148] sm:$0xff] }
  0x24   :  { %1140 = vmatpush.bf16.msra.mxu0 %v1874_v25  ;;  %v1922_v10 = vld [vmem:[#allocation5 + $0x188] sm:$0xff]  ;;  %v1905_v12 = vld [vmem:[#allocation5 + $0x100] sm:$0xff]  ;;  %v1944_v16 = vld [vmem:[#allocation5 + $0x238] sm:$0xff] }
  0x25   :  { %1153 = vmatpush.bf16.msra.mxu1 %v1882_v26  ;;  %v1930_v11 = vld [vmem:[#allocation5 + $0x1c8] sm:$0xff]  ;;  %v1913_v13 = vld [vmem:[#allocation5 + $0x140] sm:$0xff]  ;;  %v1952_v17 = vld [vmem:[#allocation5 + $0x278] sm:$0xff] }
  0x26   :  { %1166 = vmatpush.bf16.msra.mxu2 %v1890_v27  ;;  %v1921_v14 = vld [vmem:[#allocation5 + $0x180] sm:$0xff]  ;;  %v1960_v18 = vld [vmem:[#allocation5 + $0x2b8] sm:$0xff]  ;;  %v1943_v24 = vld [vmem:[#allocation5 + $0x230] sm:$0xff] }
  0x27   :  { %1179 = vmatpush.bf16.msra.mxu3 %v1898_v28  ;;  %v1929_v15 = vld [vmem:[#allocation5 + $0x1c0] sm:$0xff]  ;;  %v1968_v19 = vld [vmem:[#allocation5 + $0x2f8] sm:$0xff]  ;;  %v1951_v25 = vld [vmem:[#allocation5 + $0x270] sm:$0xff] }
  0x28   :  { %1141 = vmatpush.bf16.msra.mxu0 %v1873_v29  ;;  %v1959_v26 = vld [vmem:[#allocation5 + $0x2b0] sm:$0xff]  ;;  %v1942_v28 = vld [vmem:[#allocation5 + $0x228] sm:$0xff]  ;;  %v1941_v32 = vld [vmem:[#allocation5 + $0x220] sm:$0xff] }
  0x29   :  { %1154 = vmatpush.bf16.msra.mxu1 %v1881_v30  ;;  %v1967_v27 = vld [vmem:[#allocation5 + $0x2f0] sm:$0xff]  ;;  %v1950_v29 = vld [vmem:[#allocation5 + $0x268] sm:$0xff]  ;;  %v1949_v33 = vld [vmem:[#allocation5 + $0x260] sm:$0xff] }
  0x2a   :  { %1167 = vmatpush.bf16.msra.mxu2 %v1889_v36  ;;  %v1958_v30 = vld [vmem:[#allocation5 + $0x2a8] sm:$0xff]  ;;  %v1957_v34 = vld [vmem:[#allocation5 + $0x2a0] sm:$0xff]  ;;  %v1940_v36 = vld [vmem:[#allocation5 + $0x218] sm:$0xff] }
  0x2b   :  { %1180 = vmatpush.bf16.msra.mxu3 %v1897_v37  ;;  %1142 = vmatmul.bf16.vlgmr.msra.gmra.mxu0 %v90_v44  ;;  %v1966_v31 = vld [vmem:[#allocation5 + $0x2e8] sm:$0xff]  ;;  %v1965_v35 = vld [vmem:[#allocation5 + $0x2e0] sm:$0xff]  ;;  %v1948_v37 = vld [vmem:[#allocation5 + $0x258] sm:$0xff] }
  0x2c   :  { %1186 = vmatpush.bf16.msrb.mxu0 %v1912_v38  ;;  %1155 = vmatmul.bf16.vlgmr.msra.gmra.mxu1 %v91_v46  ;;  %v1956_v38 = vld [vmem:[#allocation5 + $0x298] sm:$0xff]  ;;  %v1955_v42 = vld [vmem:[#allocation5 + $0x290] sm:$0xff]  ;;  %v1938_v44 = vld [vmem:[#allocation5 + $0x208] sm:$0xff] }
  0x2d   :  { %1199 = vmatpush.bf16.msrb.mxu1 %v1920_v39  ;;  %1168 = vmatmul.bf16.vlgmr.msra.gmra.mxu2 %v92_v43  ;;  %v1964_v39 = vld [vmem:[#allocation5 + $0x2d8] sm:$0xff]  ;;  %v1963_v43 = vld [vmem:[#allocation5 + $0x2d0] sm:$0xff]  ;;  %v1954_v46 = vld [vmem:[#allocation5 + $0x288] sm:$0xff] }
  0x2e   :  { %1212 = vmatpush.bf16.msrb.mxu2 %v1928_v40  ;;  %1181 = vmatmul.bf16.vlgmr.msra.gmra.mxu3 %v93_v45  ;;  %v1939_v40 = vld [vmem:[#allocation5 + $0x210] sm:$0xff]  ;;  %v1946_v45 = vld [vmem:[#allocation5 + $0x248] sm:$0xff]  ;;  %v67_v56 = vld.sshfl [vmem:[#allocation1 + $0x8] sm:$0xff pattern:$0x73625140] }
  0x2f   :  { %1225 = vmatpush.bf16.msrb.mxu3 %v1936_v41  ;;  %v1947_v41 = vld [vmem:[#allocation5 + $0x250] sm:$0xff]  ;;  %v68_v55 = vld.sshfl [vmem:[#allocation1 + $0x10] sm:$0xff pattern:$0x73625140]  ;;  %v1992_v58 = vld [vmem:[#allocation5 + $0x3b8] sm:$0xff] }
  0x30   :  { %1187 = vmatpush.bf16.msrb.mxu0 %v1911_v47  ;;  %v1962_v47 = vld [vmem:[#allocation5 + $0x2c8] sm:$0xff]  ;;  %v69_v57 = vld.sshfl [vmem:[#allocation1 + $0x18] sm:$0xff pattern:$0x73625140]  ;;  %v2000_v59 = vld [vmem:[#allocation5 + $0x3f8] sm:$0xff] }
  0x31   :  { %1200 = vmatpush.bf16.msrb.mxu1 %v1919_v48  ;;  %v1937_v48 = vld [vmem:[#allocation5 + $0x200] sm:$0xff] }
  0x32   :  { %1213 = vmatpush.bf16.msrb.mxu2 %v1927_v49  ;;  %v1945_v49 = vld [vmem:[#allocation5 + $0x240] sm:$0xff] }
  0x33   :  { %1226 = vmatpush.bf16.msrb.mxu3 %v1935_v50  ;;  %v1953_v50 = vld [vmem:[#allocation5 + $0x280] sm:$0xff] }
  0x34   :  { %1188 = vmatpush.bf16.msrb.mxu0 %v1910_v51  ;;  %v1961_v51 = vld [vmem:[#allocation5 + $0x2c0] sm:$0xff] }
  0x35   :  { %1201 = vmatpush.bf16.msrb.mxu1 %v1918_v52  ;;  %v1976_v52 = vld [vmem:[#allocation5 + $0x338] sm:$0xff] }
  0x36   :  { %1214 = vmatpush.bf16.msrb.mxu2 %v1926_v53  ;;  %v1984_v53 = vld [vmem:[#allocation5 + $0x378] sm:$0xff] }
  0x37   :  { %1227 = vmatpush.bf16.msrb.mxu3 %v1934_v54  ;;  %v66_v54 = vld.sshfl [vmem:[#allocation1] sm:$0xff pattern:$0x73625140] }
  0x38   :  { %1189 = vmatpush.bf16.msrb.mxu0 %v1909_v60  ;;  %v98_v60 = vpack.c.bf16 %v66_v54, %v66_v54 }
  0x39   :  { %1202 = vmatpush.bf16.msrb.mxu1 %v1917_v61  ;;  %v100_v61 = vpack.c.bf16 %v68_v55, %v68_v55 }
  0x3a   :  { %1215 = vmatpush.bf16.msrb.mxu2 %v1925_v62  ;;  %v99_v62 = vpack.c.bf16 %v67_v56, %v67_v56 }
  0x3b   :  { %1228 = vmatpush.bf16.msrb.mxu3 %v1933_v63  ;;  %v101_v63 = vpack.c.bf16 %v69_v57, %v69_v57 }
  0x3c   :  { %1190 = vmatpush.bf16.msrb.mxu0 %v1908_v0  ;;  %v1975_v0 = vld [vmem:[#allocation5 + $0x330] sm:$0xff] }
  0x3d   :  { %1203 = vmatpush.bf16.msrb.mxu1 %v1916_v1  ;;  %v1983_v1 = vld [vmem:[#allocation5 + $0x370] sm:$0xff] }
  0x3e   :  { %1216 = vmatpush.bf16.msrb.mxu2 %v1924_v2  ;;  %v1991_v2 = vld [vmem:[#allocation5 + $0x3b0] sm:$0xff] }
  0x3f   :  { %1229 = vmatpush.bf16.msrb.mxu3 %v1932_v3  ;;  %v1999_v3 = vld [vmem:[#allocation5 + $0x3f0] sm:$0xff] }
  0x40   :  { %1191 = vmatpush.bf16.msrb.mxu0 %v1907_v4  ;;  %v1974_v4 = vld [vmem:[#allocation5 + $0x328] sm:$0xff] }
  0x41   :  { %1204 = vmatpush.bf16.msrb.mxu1 %v1915_v5  ;;  %v1982_v5 = vld [vmem:[#allocation5 + $0x368] sm:$0xff] }
  0x42   :  { %1217 = vmatpush.bf16.msrb.mxu2 %v1923_v6  ;;  %v1990_v6 = vld [vmem:[#allocation5 + $0x3a8] sm:$0xff] }
  0x43   :  { %1230 = vmatpush.bf16.msrb.mxu3 %v1931_v7  ;;  %v1998_v7 = vld [vmem:[#allocation5 + $0x3e8] sm:$0xff] }
  0x44   :  { %1192 = vmatpush.bf16.msrb.mxu0 %v1906_v8  ;;  %v1973_v8 = vld [vmem:[#allocation5 + $0x320] sm:$0xff] }
  0x45   :  { %1205 = vmatpush.bf16.msrb.mxu1 %v1914_v9  ;;  %v1981_v9 = vld [vmem:[#allocation5 + $0x360] sm:$0xff] }
  0x46   :  { %1218 = vmatpush.bf16.msrb.mxu2 %v1922_v10  ;;  %v1989_v10 = vld [vmem:[#allocation5 + $0x3a0] sm:$0xff] }
  0x47   :  { %1231 = vmatpush.bf16.msrb.mxu3 %v1930_v11  ;;  %v1997_v11 = vld [vmem:[#allocation5 + $0x3e0] sm:$0xff] }
  0x48   :  { %1193 = vmatpush.bf16.msrb.mxu0 %v1905_v12  ;;  %v1972_v12 = vld [vmem:[#allocation5 + $0x318] sm:$0xff] }
  0x49   :  { %1206 = vmatpush.bf16.msrb.mxu1 %v1913_v13  ;;  %v1980_v13 = vld [vmem:[#allocation5 + $0x358] sm:$0xff] }
  0x4a   :  { %1219 = vmatpush.bf16.msrb.mxu2 %v1921_v14  ;;  %v1988_v14 = vld [vmem:[#allocation5 + $0x398] sm:$0xff] }
  0x4b   :  { %1232 = vmatpush.bf16.msrb.mxu3 %v1929_v15  ;;  %1194 = vmatmul.bf16.vlgmr.msrb.gmra.mxu0 %v94_v21  ;;  %v1996_v15 = vld [vmem:[#allocation5 + $0x3d8] sm:$0xff]  ;;  %v1978_v21 = vld [vmem:[#allocation5 + $0x348] sm:$0xff] }
  0x4c   :  { %1238 = vmatpush.bf16.msra.mxu0 %v1944_v16  ;;  %1207 = vmatmul.bf16.vlgmr.msrb.gmra.mxu1 %v95_v23  ;;  %v1971_v16 = vld [vmem:[#allocation5 + $0x310] sm:$0xff]  ;;  %v1994_v23 = vld [vmem:[#allocation5 + $0x3c8] sm:$0xff] }
  0x4d   :  { %1251 = vmatpush.bf16.msra.mxu1 %v1952_v17  ;;  %1220 = vmatmul.bf16.vlgmr.msrb.gmra.mxu2 %v96_v20  ;;  %v1979_v17 = vld [vmem:[#allocation5 + $0x350] sm:$0xff]  ;;  %v1970_v20 = vld [vmem:[#allocation5 + $0x308] sm:$0xff] }
  0x4e   :  { %1264 = vmatpush.bf16.msra.mxu2 %v1960_v18  ;;  %1233 = vmatmul.bf16.vlgmr.msrb.gmra.mxu3 %v97_v22  ;;  %v1987_v18 = vld [vmem:[#allocation5 + $0x390] sm:$0xff]  ;;  %v1986_v22 = vld [vmem:[#allocation5 + $0x388] sm:$0xff] }
  0x4f   :  { %1277 = vmatpush.bf16.msra.mxu3 %v1968_v19  ;;  %v1995_v19 = vld [vmem:[#allocation5 + $0x3d0] sm:$0xff] }
  0x50   :  { %1239 = vmatpush.bf16.msra.mxu0 %v1943_v24  ;;  %v1969_v24 = vld [vmem:[#allocation5 + $0x300] sm:$0xff] }
  0x51   :  { %1252 = vmatpush.bf16.msra.mxu1 %v1951_v25  ;;  %v1977_v25 = vld [vmem:[#allocation5 + $0x340] sm:$0xff] }
  0x52   :  { %1265 = vmatpush.bf16.msra.mxu2 %v1959_v26  ;;  %v1985_v26 = vld [vmem:[#allocation5 + $0x380] sm:$0xff] }
  0x53   :  { %1278 = vmatpush.bf16.msra.mxu3 %v1967_v27  ;;  %v1993_v27 = vld [vmem:[#allocation5 + $0x3c0] sm:$0xff] }
  0x54   :  { %1240 = vmatpush.bf16.msra.mxu0 %v1942_v28  ;;  %v70_v28 = vld.sshfl [vmem:[#allocation1 + $0x20] sm:$0xff pattern:$0x73625140] }
  0x55   :  { %1253 = vmatpush.bf16.msra.mxu1 %v1950_v29  ;;  %v71_v29 = vld.sshfl [vmem:[#allocation1 + $0x28] sm:$0xff pattern:$0x73625140] }
  0x56   :  { %1266 = vmatpush.bf16.msra.mxu2 %v1958_v30  ;;  %v72_v30 = vld.sshfl [vmem:[#allocation1 + $0x30] sm:$0xff pattern:$0x73625140] }
  0x57   :  { %1279 = vmatpush.bf16.msra.mxu3 %v1966_v31  ;;  %v73_v31 = vld.sshfl [vmem:[#allocation1 + $0x38] sm:$0xff pattern:$0x73625140] }
  0x58   :  { %1241 = vmatpush.bf16.msra.mxu0 %v1941_v32  ;;  %v102_v32 = vpack.c.bf16 %v70_v28, %v70_v28 }
  0x59   :  { %1254 = vmatpush.bf16.msra.mxu1 %v1949_v33  ;;  %v103_v33 = vpack.c.bf16 %v71_v29, %v71_v29 }
  0x5a   :  { %1267 = vmatpush.bf16.msra.mxu2 %v1957_v34  ;;  %v104_v34 = vpack.c.bf16 %v72_v30, %v72_v30 }
  0x5b   :  { %1280 = vmatpush.bf16.msra.mxu3 %v1965_v35  ;;  %v105_v35 = vpack.c.bf16 %v73_v31, %v73_v31 }
  0x5c   :  { %1242 = vmatpush.bf16.msra.mxu0 %v1940_v36  ;;  %v2006_v36 = vld [vmem:[%s2140_s2] ss:$0 sm:$0xff]  ;;  %s2089_s2 = smov [#allocation7]  }
  0x5d   :  { %1255 = vmatpush.bf16.msra.mxu1 %v1948_v37  ;;  %s1348_s24 = sshll.u32 %s2089_s2, 4  ;;  %s1349_s24 = int_to_ptr.vmem [resolvable:$true] %s1348_s24 }
  0x5e   :  { %1268 = vmatpush.bf16.msra.mxu2 %v1956_v38 }
  0x5f   :  { %1281 = vmatpush.bf16.msra.mxu3 %v1964_v39 }
  0x60   :  { %1243 = vmatpush.bf16.msra.mxu0 %v1939_v40 }
  0x61   :  { %1256 = vmatpush.bf16.msra.mxu1 %v1947_v41 }
  0x62   :  { %1269 = vmatpush.bf16.msra.mxu2 %v1955_v42 }
  0x63   :  { %1282 = vmatpush.bf16.msra.mxu3 %v1963_v43 }
  0x64   :  { %1244 = vmatpush.bf16.msra.mxu0 %v1938_v44 }
  0x65   :  { %1257 = vmatpush.bf16.msra.mxu1 %v1946_v45 }
  0x66   :  { %1270 = vmatpush.bf16.msra.mxu2 %v1954_v46 }
  0x67   :  { %1283 = vmatpush.bf16.msra.mxu3 %v1962_v47 }
  0x68   :  { %1245 = vmatpush.bf16.msra.mxu0 %v1937_v48 }
  0x69   :  { %1258 = vmatpush.bf16.msra.mxu1 %v1945_v49 }
  0x6a   :  { %1271 = vmatpush.bf16.msra.mxu2 %v1953_v50 }
  0x6b   :  { %1284 = vmatpush.bf16.msra.mxu3 %v1961_v51  ;;  %1246 = vmatmul.bf16.vlgmr.msra.gmra.mxu0 %v98_v60 }
  0x6c   :  { %1290 = vmatpush.bf16.msrb.mxu0 %v1976_v52  ;;  %1259 = vmatmul.bf16.vlgmr.msra.gmra.mxu1 %v99_v62 }
  0x6d   :  { %1303 = vmatpush.bf16.msrb.mxu1 %v1984_v53  ;;  %1272 = vmatmul.bf16.vlgmr.msra.gmra.mxu2 %v100_v61 }
  0x6e   :  { %1316 = vmatpush.bf16.msrb.mxu2 %v1992_v58  ;;  %1285 = vmatmul.bf16.vlgmr.msra.gmra.mxu3 %v101_v63 }
  0x6f   :  { %1329 = vmatpush.bf16.msrb.mxu3 %v2000_v59 }
  0x70   :  { %1291 = vmatpush.bf16.msrb.mxu0 %v1975_v0 }
  0x71   :  { %1304 = vmatpush.bf16.msrb.mxu1 %v1983_v1 }
  0x72   :  { %1317 = vmatpush.bf16.msrb.mxu2 %v1991_v2 }
  0x73   :  { %1330 = vmatpush.bf16.msrb.mxu3 %v1999_v3 }
  0x74   :  { %1292 = vmatpush.bf16.msrb.mxu0 %v1974_v4 }
  0x75   :  { %1305 = vmatpush.bf16.msrb.mxu1 %v1982_v5 }
  0x76   :  { %1318 = vmatpush.bf16.msrb.mxu2 %v1990_v6 }
  0x77   :  { %1331 = vmatpush.bf16.msrb.mxu3 %v1998_v7 }
  0x78   :  { %1293 = vmatpush.bf16.msrb.mxu0 %v1973_v8 }
  0x79   :  { %1306 = vmatpush.bf16.msrb.mxu1 %v1981_v9 }
  0x7a   :  { %1319 = vmatpush.bf16.msrb.mxu2 %v1989_v10 }
  0x7b   :  { %1332 = vmatpush.bf16.msrb.mxu3 %v1997_v11 }
  0x7c   :  { %1294 = vmatpush.bf16.msrb.mxu0 %v1972_v12 }
  0x7d   :  { %1307 = vmatpush.bf16.msrb.mxu1 %v1980_v13 }
  0x7e   :  { %1320 = vmatpush.bf16.msrb.mxu2 %v1988_v14 }
  0x7f   :  { %1333 = vmatpush.bf16.msrb.mxu3 %v1996_v15 }
  0x80   :  { %1295 = vmatpush.bf16.msrb.mxu0 %v1971_v16 }
  0x81   :  { %1308 = vmatpush.bf16.msrb.mxu1 %v1979_v17 }
  0x82   :  { %1321 = vmatpush.bf16.msrb.mxu2 %v1987_v18 }
  0x83   :  { %1334 = vmatpush.bf16.msrb.mxu3 %v1995_v19 }
  0x84   :  { %1296 = vmatpush.bf16.msrb.mxu0 %v1970_v20 }
  0x85   :  { %1309 = vmatpush.bf16.msrb.mxu1 %v1978_v21 }
  0x86   :  { %1322 = vmatpush.bf16.msrb.mxu2 %v1986_v22 }
  0x87   :  { %1335 = vmatpush.bf16.msrb.mxu3 %v1994_v23 }
  0x88   :  { %1297 = vmatpush.bf16.msrb.mxu0 %v1969_v24 }
  0x89   :  { %1310 = vmatpush.bf16.msrb.mxu1 %v1977_v25 }
  0x8a   :  { %1323 = vmatpush.bf16.msrb.mxu2 %v1985_v26 }
  0x8b   :  { %1336 = vmatpush.bf16.msrb.mxu3 %v1993_v27  ;;  %1298 = vmatmul.bf16.vlgmr.msrb.gmra.mxu0 %v102_v32 }
  0x8c   :  { %1311 = vmatmul.bf16.vlgmr.msrb.gmra.mxu1 %v103_v33 }
  0x8d   :  { %1324 = vmatmul.bf16.vlgmr.msrb.gmra.mxu2 %v104_v34 }
  0x8e   :  { %1337 = vmatmul.bf16.vlgmr.msrb.gmra.mxu3 %v105_v35 }
  0xa8   :  { %v1143_v37 = vpop.f32.mrf.mxu0 }
  0xa9   :  { %v1144_v38 = vadd.f32 %v2006_v36, %v1143_v37  ;;  %v1156_v39 = vpop.f32.mrf.mxu1 }
  0xab   :  { %v1157_v40 = vadd.f32 %v1156_v39, %v1144_v38 }
  0xb0   :  { %v1169_v41 = vpop.f32.mrf.mxu2  ;;  %v1145_v44 = vpop.f32.mrf.mxu0 }
  0xb1   :  { %v1170_v42 = vadd.f32 %v1169_v41, %v1157_v40  ;;  %v1182_v43 = vpop.f32.mrf.mxu3  ;;  %v1158_v46 = vpop.f32.mrf.mxu1 }
  0xb3   :  { %v1183_v45 = vadd.f32 %v1182_v43, %v1170_v42 }
  0xb8   :  { %v1171_v47 = vpop.f32.mrf.mxu2 }
  0xb9   :  { %v1184_v48 = vpop.f32.mrf.mxu3 }
  0xc8   :  { %v1195_v49 = vpop.f32.mrf.mxu0 }
  0xc9   :  { %v1208_v50 = vpop.f32.mrf.mxu1  ;;  %v1196_v59 = vadd.f32 %v1195_v49, %v1183_v45 }
  0xcb   :  { %v1209_v63 = vadd.f32 %v1208_v50, %v1196_v59 }
  0xd0   :  { %v1221_v51 = vpop.f32.mrf.mxu2  ;;  %v1197_v53 = vpop.f32.mrf.mxu0 }
  0xd1   :  { %v1234_v52 = vpop.f32.mrf.mxu3  ;;  %v1210_v54 = vpop.f32.mrf.mxu1  ;;  %v1222_v1 = vadd.f32 %v1221_v51, %v1209_v63 }
  0xd3   :  { %v1235_v4 = vadd.f32 %v1234_v52, %v1222_v1 }
  0xd8   :  { %v1223_v55 = vpop.f32.mrf.mxu2 }
  0xd9   :  { %v1236_v56 = vpop.f32.mrf.mxu3 }
  0xe8   :  { %v1247_v57 = vpop.f32.mrf.mxu0 }
  0xe9   :  { %v1260_v58 = vpop.f32.mrf.mxu1  ;;  %v1248_v5 = vadd.f32 %v1247_v57, %v1235_v4 }
  0xeb   :  { %v1261_v6 = vadd.f32 %v1260_v58, %v1248_v5 }
  0xf0   :  { %v1273_v60 = vpop.f32.mrf.mxu2  ;;  %v1249_v62 = vpop.f32.mrf.mxu0 }
  0xf1   :  { %v1286_v61 = vpop.f32.mrf.mxu3  ;;  %v1262_v0 = vpop.f32.mrf.mxu1  ;;  %v1274_v7 = vadd.f32 %v1273_v60, %v1261_v6 }
  0xf3   :  { %v1287_v8 = vadd.f32 %v1286_v61, %v1274_v7 }
  0xf8   :  { %v1275_v2 = vpop.f32.mrf.mxu2 }
  0xf9   :  { %v1288_v3 = vpop.f32.mrf.mxu3 }
 0x108   :  { %v1299_v9 = vpop.f32.mrf.mxu0 }
 0x109   :  { %v1312_v10 = vpop.f32.mrf.mxu1  ;;  %v1300_v11 = vadd.f32 %v1299_v9, %v1287_v8 }
 0x10b   :  { %v1313_v12 = vadd.f32 %v1312_v10, %v1300_v11 }
 0x110   :  { %v1325_v13 = vpop.f32.mrf.mxu2  ;;  %v1301_v16 = vpop.f32.mrf.mxu0 }
 0x111   :  { %v1338_v14 = vpop.f32.mrf.mxu3  ;;  %v1326_v15 = vadd.f32 %v1325_v13, %v1313_v12  ;;  %v1314_v17 = vpop.f32.mrf.mxu1 }
 0x113   :  { %v1339_v18 = vadd.f32 %v1338_v14, %v1326_v15 }
 0x115   :  { %1342 = vst [vmem:[#allocation7] sm:$0x3] %v1339_v18 }
 0x116   :  { %1353 = dma.vmem_to_hbm [thread:$0]  %s1349_s24, 32, %s1351_s27, [#allocation4]  }
 0x118   :  { %v1327_v19 = vpop.f32.mrf.mxu2 }
 0x119   :  { %v1340_v20 = vpop.f32.mrf.mxu3 }
 0x11a   :  { %2083 = dma.done.wait [#allocation4], 32  }
 0x11b   :  { %2084 = vsyncadd [#allocation4], 4294967264 }
 0x11c   :  { %1358 = vsyncpa [#allocation3], 1 }
 0x11d   :  { %1359 = vsyncpa [#allocation6], 1 }
 0x11e   :  { %1360 = vsyncpa [#allocation4], 1 }

</bundles_post_ra>
